<compile_context>
chip_gen: v7x
topology: tpu7x:2x2x1
jax: 0.10.0
libtpu: 0.0.40
codegen_flags: <defaults>
</compile_context>

<pallas_src>
import numpy as np
import jax
import jax.numpy as jnp
from jax.experimental import pallas as pl
from jax.experimental.pallas import tpu as pltpu

# ----- module configuration (small but consistent with the module) -----
EMBEDDING_DIM = 16
N_HEADS = 2
D = EMBEDDING_DIM * N_HEADS          # module: self.embedding_dim = embedding_dim * n_heads
VOCAB = 32                           # len(featureSet.concept_map)
MAX_VISITS = 100                     # hardcoded in the module (self.max_visits = 100)

# ----- kernel layout -----
LANES = 128
PACK = LANES // D                    # visit-slot rows packed per 128-lane output row
OUT_DTYPE = jnp.bfloat16             # review: bf16 writeback (f32 accumulation inside)

assert LANES % D == 0 and PACK * D == LANES, "D must divide 128 for lane packing"
assert PACK * VOCAB == LANES, "this layout relies on PACK*VOCAB == 128 (dense K)"


def visit_embed_kernel(counts_ref, extra_ref, w_blk_ref, w_extra_ref, out_ref):
    # counts_ref : [ROW_TILE, PACK*VOCAB] bf16 — PACK visit slots per 128-lane row
    # extra_ref  : [ROW_TILE, 2*PACK]     f32  — per-slot [(1-fill), bias] pairs
    # w_blk_ref  : [PACK*VOCAB, PACK*D]   bf16 — kron(I_PACK, concept_embedding)
    # w_extra_ref: [2*PACK, PACK*D]       f32  — kron(I_PACK, [pad_embedding; ones])
    # out_ref    : [ROW_TILE, PACK*D]     bf16 — lane-dense packed output
    acc = jnp.dot(counts_ref[...], w_blk_ref[...],
                  preferred_element_type=jnp.float32)
    acc = acc + jnp.dot(extra_ref[...], w_extra_ref[...],
                        preferred_element_type=jnp.float32)
    out_ref[...] = acc.astype(out_ref.dtype)


def _choose_row_tile(n_rows_raw):
    """Packed-row tile: large enough to amortize per-step overhead at scale
    (target 2048 packed rows ~ 0.5 MiB bf16 counts + 0.5 MiB bf16 out), but
    capped so the grid has >= 2 steps (v7x has 2 TensorCores; with grid=(1,)
    the second core idles).  Kept a multiple of 16 (bf16 native sublane tile)."""
    target = 2048
    rt = min(target, max(16, n_rows_raw // 2))
    rt = max(16, (rt // 16) * 16)
    return rt


def visit_transformer_forward(counts, w, pad, fill, bias):
    """counts [B, MAX_VISITS, VOCAB] f32 (per-visit code counts, right-aligned),
    w [VOCAB, D], pad [D], fill [B, MAX_VISITS, 1] (1 = real visit slot),
    bias [B, MAX_VISITS, 1] (0.1*age + 0.1*gender per person).
    Returns output_emb [B, MAX_VISITS, D] bf16 (f32 accumulation inside)."""
    B = counts.shape[0]
    T = B * MAX_VISITS
    n_rows_raw = pl.cdiv(T, PACK)
    row_tile = _choose_row_tile(n_rows_raw)
    n_rows = pl.cdiv(n_rows_raw, row_tile) * row_tile
    t_pad = n_rows * PACK

    # ---- pack counts: [T, VOCAB] -> [T/PACK, 128] (contiguous, zero-waste) ----
    # NOTE: bf16 counts are exact for per-(visit, code) counts <= 256; keep f32
    # here if real data can exceed that.
    c = counts.reshape(T, VOCAB).astype(jnp.bfloat16)
    c = jnp.pad(c, ((0, t_pad - T), (0, 0)))
    counts_pk = c.reshape(n_rows, PACK * VOCAB)

    # ---- tiny per-slot side input: [(1-fill), bias] pairs, kept in f32 ----
    ex = jnp.concatenate([1.0 - fill.reshape(T, 1), bias.reshape(T, 1)],
                         axis=1).astype(jnp.float32)
    ex = jnp.pad(ex, ((0, t_pad - T), (0, 0)))
    extra_pk = ex.reshape(n_rows, 2 * PACK)

    # ---- block-diagonal weights (tiny, built once per call) ----
    w_blk = jnp.kron(jnp.eye(PACK, dtype=jnp.float32),
                     w.astype(jnp.float32)).astype(jnp.bfloat16)      # [128, 128]
    pad_ones = jnp.stack([pad.reshape(D).astype(jnp.float32),
                          jnp.ones((D,), jnp.float32)], axis=0)        # [2, D]
    w_extra = jnp.kron(jnp.eye(PACK, dtype=jnp.float32), pad_ones)     # [8, 128]

    # ---- VMEM budget: double-buffered counts/extra/out tiles + resident W ----
    step_bytes = row_tile * LANES * (2 + 4 + 2)   # counts bf16 + extra(f32, lane-padded) + out bf16
    vmem_limit = int(min(48 << 20, max(16 << 20, 3 * step_bytes + (1 << 20))))

    out_packed = pl.pallas_call(
        visit_embed_kernel,
        out_shape=jax.ShapeDtypeStruct((n_rows, PACK * D), OUT_DTYPE),
        grid_spec=pltpu.PrefetchScalarGridSpec(
            num_scalar_prefetch=0,
            grid=(n_rows // row_tile,),
            in_specs=[
                pl.BlockSpec((row_tile, PACK * VOCAB), lambda i: (i, 0)),
                pl.BlockSpec((row_tile, 2 * PACK), lambda i: (i, 0)),
                pl.BlockSpec((PACK * VOCAB, PACK * D), lambda i: (0, 0)),  # resident
                pl.BlockSpec((2 * PACK, PACK * D), lambda i: (0, 0)),      # resident
            ],
            out_specs=pl.BlockSpec((row_tile, PACK * D), lambda i: (i, 0)),
        ),
        compiler_params=pltpu.CompilerParams(
            dimension_semantics=("parallel",),   # shards grid across TCs on v7x
            vmem_limit_bytes=vmem_limit),
    )(counts_pk, extra_pk, w_blk, w_extra)

    # Packed [n_rows, PACK*D] is row-major-identical to [t_pad, D]: free view.
    # Keep the [:T] slice — padded rows are zeros, not pad_embedding.
    return out_packed.reshape(-1, D)[:T].reshape(B, MAX_VISITS, D)


def build_synthetic_data(key):
    """Emulates set_data() and the index bookkeeping of forward() (pure glue)."""
    person_range = [0, 1]
    B = len(person_range)
    n_visits = {0: 5, 1: 9}
    codes_per_visit = 3

    # flat code stream + visit_chunks / person_indices bookkeeping
    all_codes = []
    person_indices = {}
    visit_chunks = {}
    for p in person_range:
        person_indices[p] = len(all_codes)
        chunks = [0]
        for _ in range(n_visits[p]):
            chunks.append(chunks[-1] + codes_per_visit)
        visit_chunks[p] = chunks
        n_codes_p = chunks[-1]
        key, sub = jax.random.split(key)
        codes_p = np.asarray(
            jax.random.randint(sub, (n_codes_p,), 0, VOCAB, dtype=jnp.int32))
        all_codes.extend(codes_p.tolist())
    all_codes = np.asarray(all_codes, dtype=np.int32)

    births = {0: 1960, 1: 1985}
    genders = {0: 0, 1: 1}

    # --- build count matrix, fill mask, per-person bias (right-aligned) ---
    counts = np.zeros((B, MAX_VISITS, VOCAB), dtype=np.float32)
    fill = np.zeros((B, MAX_VISITS, 1), dtype=np.float32)
    bias = np.zeros((B, MAX_VISITS, 1), dtype=np.float32)
    for i, p in enumerate(person_range):
        nv = n_visits[p]
        seq_len = min(MAX_VISITS, nv)
        for j in range(seq_len):
            v = nv - seq_len + j                      # last seq_len visits
            slot = MAX_VISITS - seq_len + j           # right-aligned placement
            lo = person_indices[p] + visit_chunks[p][v]
            hi = person_indices[p] + visit_chunks[p][v + 1]
            for code in all_codes[lo:hi]:
                counts[i, slot, code] += 1.0
            fill[i, slot, 0] = 1.0
        age = (int(births[p]) - 1900) / 120.0
        gender = 2 * genders[p] - 1
        bias[i, :, 0] = age * 0.1 + gender * 0.1

    return counts, fill, bias, key


if __name__ == "__main__":
    key = jax.random.PRNGKey(0)

    # deterministic parameter init
    key, kw, kp = jax.random.split(key, 3)
    concept_embedding = jax.random.normal(kw, (VOCAB, D), dtype=jnp.float32)
    # The module initializes pad_embedding to zeros; use a small non-zero value
    # here so the in-kernel (1-fill)*pad fold is actually exercised.
    pad_embedding = 0.1 * jax.random.normal(kp, (D,), dtype=jnp.float32)

    counts_np, fill_np, bias_np, key = build_synthetic_data(key)
    counts = jnp.asarray(counts_np)
    fill = jnp.asarray(fill_np)
    bias = jnp.asarray(bias_np)

    fwd = jax.jit(visit_transformer_forward)
    out = fwd(counts, concept_embedding, pad_embedding, fill, bias)
    out = jax.block_until_ready(out)

    B = counts.shape[0]
    T = B * MAX_VISITS
    out_f32 = np.asarray(out, dtype=np.float32)
    assert out_f32.shape == (B, MAX_VISITS, D)

    # (1) same-math reference: bf16 counts/W, f32 accumulate + f32 fill/bias, bf16 store
    c_bf = counts.reshape(T, VOCAB).astype(jnp.bfloat16).astype(jnp.float32)
    w_bf = concept_embedding.astype(jnp.bfloat16).astype(jnp.float32)
    ref_same = (c_bf @ w_bf
                + (1.0 - fill.reshape(T, 1)) * pad_embedding.reshape(1, D)
                + bias.reshape(T, 1)).astype(jnp.bfloat16).astype(jnp.float32)
    np.testing.assert_allclose(
        out_f32, np.asarray(ref_same).reshape(B, MAX_VISITS, D),
        rtol=1e-2, atol=1e-2)

    # (2) full-f32 module semantics (bf16 W + bf16 output rounding ~1%)
    ref_f32 = (counts.reshape(T, VOCAB) @ concept_embedding
               + (1.0 - fill.reshape(T, 1)) * pad_embedding.reshape(1, D)
               + bias.reshape(T, 1)).reshape(B, MAX_VISITS, D)
    np.testing.assert_allclose(out_f32, np.asarray(ref_f32),
                               rtol=5e-2, atol=5e-2)

    print("KERNEL_OK")
</pallas_src>

<mosaic_0001>
module attributes {stable_mosaic.version = 11 : i64} {
  func.func @visit_embed_kernel(%arg0: i32, %arg1: memref<16x128xbf16, #tpu.memory_space<vmem>>, %arg2: memref<16x8xf32, #tpu.memory_space<vmem>>, %arg3: memref<128x128xbf16, #tpu.memory_space<vmem>>, %arg4: memref<8x128xf32, #tpu.memory_space<vmem>>, %arg5: memref<16x128xbf16, #tpu.memory_space<vmem>>) attributes {dimension_semantics = [#tpu.dimension_semantics<parallel>], iteration_bounds = array<i64: 4>, scalar_prefetch = 0 : i64, scratch_operands = 0 : i64, tpu.core_type = #tpu.core_type<tc>, window_params = [{transform_indices = @transform_0, window_bounds = array<i64: 16, 128>}, {transform_indices = @transform_1, window_bounds = array<i64: 16, 8>}, {pipeline_mode = #tpu.pipeline_mode<synchronous>, transform_indices = @transform_2, window_bounds = array<i64: 128, 128>}, {pipeline_mode = #tpu.pipeline_mode<synchronous>, transform_indices = @transform_3, window_bounds = array<i64: 8, 128>}, {transform_indices = @transform_4, window_bounds = array<i64: 16, 128>}]} {
    %c0 = arith.constant 0 : index
    %c0_0 = arith.constant 0 : index
    %0 = vector.load %arg1[%c0, %c0_0] : memref<16x128xbf16, #tpu.memory_space<vmem>>, vector<16x128xbf16>
    %c0_1 = arith.constant 0 : index
    %c0_2 = arith.constant 0 : index
    %1 = vector.load %arg3[%c0_1, %c0_2] : memref<128x128xbf16, #tpu.memory_space<vmem>>, vector<128x128xbf16>
    %cst = arith.constant dense<0.000000e+00> : vector<16x128xf32>
    %2 = tpu.matmul %0, %1, %cst {dimension_numbers = #tpu.dot_dimension_numbers<[1], [0], [0], [1], [0, 0, 1, 1], [], []>} : vector<16x128xbf16>, vector<128x128xbf16>, vector<16x128xf32> -> vector<16x128xf32>
    %c0_3 = arith.constant 0 : index
    %c0_4 = arith.constant 0 : index
    %3 = vector.load %arg2[%c0_3, %c0_4] : memref<16x8xf32, #tpu.memory_space<vmem>>, vector<16x8xf32>
    %c0_5 = arith.constant 0 : index
    %c0_6 = arith.constant 0 : index
    %4 = vector.load %arg4[%c0_5, %c0_6] : memref<8x128xf32, #tpu.memory_space<vmem>>, vector<8x128xf32>
    %cst_7 = arith.constant dense<0.000000e+00> : vector<16x128xf32>
    %5 = tpu.matmul %3, %4, %cst_7 {dimension_numbers = #tpu.dot_dimension_numbers<[1], [0], [0], [1], [0, 0, 1, 1], [], []>} : vector<16x8xf32>, vector<8x128xf32>, vector<16x128xf32> -> vector<16x128xf32>
    %6 = arith.addf %2, %5 : vector<16x128xf32>
    %7 = arith.truncf %6 : vector<16x128xf32> to vector<16x128xbf16>
    %c0_8 = arith.constant 0 : index
    %c0_9 = arith.constant 0 : index
    %8 = vector.load %arg5[%c0_8, %c0_9] : memref<16x128xbf16, #tpu.memory_space<vmem>>, vector<16x128xbf16>
    tpu.vector_store %arg5[%c0_8, %c0_9], %7 {strides = array<i32>} : memref<16x128xbf16, #tpu.memory_space<vmem>>, vector<16x128xbf16>,
    return
  }
  func.func @transform_0(%arg0: i32) -> (i32, i32) {
    %c0_i32 = arith.constant 0 : i32
    %c0_i32_0 = arith.constant 0 : i32
    return %arg0, %c0_i32 : i32, i32
  }
  func.func @transform_1(%arg0: i32) -> (i32, i32) {
    %c0_i32 = arith.constant 0 : i32
    %c0_i32_0 = arith.constant 0 : i32
    return %arg0, %c0_i32 : i32, i32
  }
  func.func @transform_2(%arg0: i32) -> (i32, i32) {
    %c0_i32 = arith.constant 0 : i32
    %c0_i32_0 = arith.constant 0 : i32
    %c0_i32_1 = arith.constant 0 : i32
    return %c0_i32, %c0_i32_0 : i32, i32
  }
  func.func @transform_3(%arg0: i32) -> (i32, i32) {
    %c0_i32 = arith.constant 0 : i32
    %c0_i32_0 = arith.constant 0 : i32
    %c0_i32_1 = arith.constant 0 : i32
    return %c0_i32, %c0_i32_0 : i32, i32
  }
  func.func @transform_4(%arg0: i32) -> (i32, i32) {
    %c0_i32 = arith.constant 0 : i32
    %c0_i32_0 = arith.constant 0 : i32
    return %arg0, %c0_i32 : i32, i32
  }
}

</mosaic_0001>

<bundles_post_ra>
// kernel: visit_transformer_forward.1
= control target key start
LH: loop header
LB: loop body
LE: loop exit
PB: predicated region body
PF: predicated region fallthrough
CT: control target
= control target key end

     0   :  { %s624_s15 = smov 0   ;;  %s681_s0 = inlined_call_operand.vmem [shape: bf16[64,128], index: 0, kind: input, shape index: {}]   ;;  %s682_s1 = inlined_call_operand.vmem [shape: f32[64,8], index: 1, kind: input, shape index: {}]   ;;  %s683_s2 = inlined_call_operand.vmem [shape: bf16[128,128], index: 2, kind: input, shape index: {}]   ;;  %s684_s3 = inlined_call_operand.vmem [shape: f32[8,128], index: 3, kind: input, shape index: {}]   ;;  %s685_s4 = inlined_call_operand.vmem [shape: bf16[64,128], index: 4, kind: output, shape index: {}]  }
   0x1 LB: > { %s500_s16 = sadd.s32 4294967295, %s595_s15   ;;  %p504_p0 = scmp.ge.s32.totalorder %s595_s15, 1  ;;  %s595_s15 = sphi %s624_s15, %s14_s15  }
   0x2   : > { %p174_p1 = scmp.lt.s32.totalorder %s595_s15, 5 }
   0x4   : > { %p175_p2 = pnand %p504_p0, %p174_p1 }
   0x5   : > { %v580_v0 = vld [vmem:[%s683_s2] sm:$0xff] (!%p175_p2)   ;;  %v597_v1 = vmov (!%p175_p2), 0.0   ;;  %s505_s19 = sshll.u32 (!%p175_p2), %s500_s16, 1  ;;  %v581_v2 = vld [vmem:[%s683_s2 + $0x8] sm:$0xff] (!%p175_p2)   ;;  %v582_v3 = vld [vmem:[%s683_s2 + $0x10] sm:$0xff] (!%p175_p2)   ;;  %vm245_vm0 = vcmask (!%p175_p2), 64512  }
   0x6   : > { %178 = sbr.rel (%p175_p2) target bundleno = 257 (0x101), region = 36  ;;  %550 = vmatprep.subr.bf16.mxu1 (!%p175_p2), %v597_v1  ;;  %p206_p3 = scmp.lt.s32.totalorder (!%p175_p2), %s505_s19, 7  ;;  %vm598_vm1 = vmmov (!%p175_p2), 0   ;;  %v244_v4 = vld [vmem:[%s684_s3] sm:$0xff] (!%p175_p2)  ;;  %v583_v7 = vld [vmem:[%s683_s2 + $0x18] sm:$0xff] (!%p175_p2)   ;;  %v585_v9 = vld [vmem:[%s683_s2 + $0x28] sm:$0xff] (!%p175_p2)  }
   0x7   : > { %551 = vmatpush3.bf16.msra.mxu1 (!%p175_p2), %v580_v0  ;;  %566 = vmatprep.mubr.msk.bf16.mxu1 (!%p175_p2), %vm598_vm1, %v597_v1  ;;  %v584_v8 = vld [vmem:[%s683_s2 + $0x20] sm:$0xff] (!%p175_p2)   ;;  %v586_v10 = vld [vmem:[%s683_s2 + $0x30] sm:$0xff] (!%p175_p2)   ;;  %v587_v11 = vld [vmem:[%s683_s2 + $0x38] sm:$0xff] (!%p175_p2)  }
   0x8   : > { %552 = vmatprep.subr.bf16.mxu1 (!%p175_p2), %v597_v1  ;;  %545 = vmatprep.subr.mxu0 (!%p175_p2), %v244_v4 }
   0x9   : > { %546 = vmatpush3.msra.mxu0 (!%p175_p2), %v244_v4 }
   0xb   : > { %553 = vmatpush3.bf16.msra.mxu1 (!%p175_p2), %v581_v2 }
   0xc   : > { %554 = vmatprep.subr.bf16.mxu1 (!%p175_p2), %v597_v1 }
   0xd   : > { %s687_s19 = smov (!%p206_p3, %s505_s19), 7 }
   0xe   : > { %s506_s24 = sshll.u32 %s687_s19, 2  ;;  %s508_s27 = sshll.u32 %s687_s19, 3 }
   0xf   : > { %s209_s30 = scalar_lea.vmem %s681_s0, %s506_s24  ;;  %s215_s7 = scalar_lea.vmem %s682_s1, %s508_s27  ;;  %555 = vmatpush3.bf16.msra.mxu1 %v582_v3 }
  0x10   : > { %v242_v5 = vld [vmem:[%s215_s7] sm:$0xff]  ;;  %v243_v6 = vld [vmem:[%s215_s7 + $0x8] sm:$0xff]  ;;  %556 = vmatprep.subr.bf16.mxu1 %v597_v1  ;;  %s221_s22 = scalar_lea.vmem %s685_s4, %s506_s24 }
  0x11   : > { %547 = vmatprep.mubr.msk.f32.mxu0 %vm245_vm0, %v242_v5  ;;  %v588_v12 = vld [vmem:[%s209_s30] sm:$0xff]  }
  0x12   : > { %548 = vmatmul.mubr.msk.f32.vlgmr.msra.gmra.mrb[0].mxu0 %vm245_vm0, %v243_v6 }
  0x13   : > { %557 = vmatpush3.bf16.msra.mxu1 %v583_v7 }
  0x14   : > { %558 = vmatprep.subr.bf16.mxu1 %v597_v1 }
  0x17   : > { %559 = vmatpush3.bf16.msra.mxu1 %v584_v8 }
  0x18   : > { %560 = vmatprep.subr.bf16.mxu1 %v597_v1 }
  0x1b   : > { %561 = vmatpush3.bf16.msra.mxu1 %v585_v9 }
  0x1c   : > { %562 = vmatprep.subr.bf16.mxu1 %v597_v1 }
  0x1f   : > { %563 = vmatpush3.bf16.msra.mxu1 %v586_v10 }
  0x20   : > { %564 = vmatprep.subr.bf16.mxu1 %v597_v1 }
  0x23   : > { %565 = vmatpush3.bf16.msra.mxu1 %v587_v11 }
  0x26   : > { %567 = vmatmul.mubr.bf16.vlgmr.msra.gmra.mrb[0].mxu1 %v588_v12 }
  0xe5   : > { %v549_v13 = vpop.f32.mrb[0].mxu0 }
  0xe6   : > { %v318_v14 = vpop.f32.mrb[1].mxu0 }
  0xf9   : > { %v415_v15 = vpop.f32.mrb[0].mxu1 }
  0xfa   : > { %v416_v16 = vadd.f32 %v415_v15, %v318_v14  ;;  %v568_v17 = vpop.f32.mrb[1].mxu1 }
  0xfb   : > { %v418_v18 = vpop.f32.mrb[2].mxu1 }
  0xfc   : > { %v419_v19 = vadd.f32 %v549_v13, %v418_v18  ;;  %v569_v20 = vpop.f32.mrb[3].mxu1 }
  0xfe   : > { %v531_v21 = vpack.c.bf16 %v419_v19, %v416_v16 }
 0x100   : > { %532 = vst [vmem:[%s221_s22] sm:$0xff] %v531_v21  }
 0x101 PF: > { %s14_s15 = sadd.s32 1, %s595_s15  }
 0x102   : > { %p11_p4 = scmp.ge.s32.totalorder %s14_s15, 6  }
 0x104   :  { %13 = sbr.rel (!%p11_p4) target bundleno = 1 (0x1), region = 69 }

</bundles_post_ra>
